<compile_context>
chip_gen: v7x
topology: tpu7x:2x2x1
jax: 0.10.0
libtpu: 0.0.40
codegen_flags: <defaults>
</compile_context>

<pallas_src>
import jax
import jax.numpy as jnp
import numpy as np
from jax import lax
from jax.experimental import pallas as pl
from jax.experimental.pallas import tpu as pltpu


def transition_kernel(x_ref, scale_ref, bias_ref, w_ref, o_ref):
    """x_ref:  (bm, 2, W2, 2*C)   row-block, H-tap, W2, (W-tap, C) on lanes
       scale/bias: (1, 2*C)       folded BN affine, duplicated for both W-taps
       w_ref:  (C, Cout_p)        conv weight^T with 0.25 pooling factor folded in
       o_ref:  (bm, W2, Cout_p)   lane-dense output block
    """
    bm, _, w2, c2 = x_ref.shape
    c = c2 // 2
    s = scale_ref[...]                                  # (1, 2C) -> bcast (bm, W2, 2C)
    b = bias_ref[...]

    # Process the two H-taps one at a time: halves the peak f32 intermediate
    # from (bm, 2, W2, 2C) to (bm, W2, 2C).
    x0 = x_ref[:, pl.ds(0, 1), :, :].reshape(bm, w2, c2).astype(jnp.float32)
    y = jnp.maximum(x0 * s + b, 0.0)                    # BN affine + ReLU, H-tap 0
    x1 = x_ref[:, pl.ds(1, 1), :, :].reshape(bm, w2, c2).astype(jnp.float32)
    y = y + jnp.maximum(x1 * s + b, 0.0)                # + H-tap 1
    y = y[..., :c] + y[..., c:]                         # sum the two W taps -> (bm, W2, C)

    # 1x1 conv == matmul over channels (MXU); 0.25 already folded into w.
    # 3-D dot_general keeps (W2, C)/(W2, Cout_p) lane layout untouched.
    o_ref[...] = lax.dot_general(
        y, w_ref[...],
        dimension_numbers=(((2,), (0,)), ((), ())),
        preferred_element_type=jnp.float32).astype(o_ref.dtype)


def _pick_bm(M2, W2, C, Cout_p, in_itemsize,
             target_out_rows=512, vmem_budget=24 * 1024 * 1024):
    """Largest divisor of M2 that satisfies the row-target, VMEM-budget and
    grid-step constraints (no padding copy is ever needed)."""
    rows_cap = max(1, target_out_rows // max(1, W2))
    # VMEM budget: double-buffered input + output blocks, constant operands
    # (2 buffers each), plus in-kernel f32 temporaries (~3x one H-tap slab).
    fixed = 2 * C * Cout_p * 4 + 2 * 2 * (2 * C) * 4
    per_row = (2 * (2 * W2 * 2 * C * in_itemsize)       # input block (double buffered)
               + 2 * (W2 * Cout_p * 4)                  # output block (double buffered)
               + 3 * (W2 * 2 * C * 4))                  # f32 temporaries in the kernel
    vmem_cap = max(1, (vmem_budget - fixed) // per_row)
    # >= 8 grid steps when possible: >=4 steps per TensorCore on v7x megacore
    # so BlockSpec double-buffering actually overlaps DMA with compute.
    steps_cap = max(1, M2 // min(8, M2))
    cap = max(1, min(rows_cap, vmem_cap, steps_cap))
    bm = 1
    for d in range(1, int(cap) + 1):                    # trace-time, <= ~512 iters
        if M2 % d == 0:
            bm = d
    return bm


def transition_forward(x_nchw, gamma, beta, conv_w, eps=1e-5):
    """Pallas equivalent of Transition.forward. x_nchw: (N, C, H, W) -> (N, Cout, H/2, W/2)."""
    N, C, H, W = x_nchw.shape
    Cout = conv_w.shape[0]
    assert H % 2 == 0 and W % 2 == 0
    H2, W2 = H // 2, W // 2
    LANE = 128

    # --- glue: NCHW -> NHWC (only materialized copy of x), then FREE reshape view ---
    x_nhwc = jnp.transpose(x_nchw, (0, 2, 3, 1))                         # (N, H, W, C)
    xv = x_nhwc.reshape(N * H2, 2, W2, 2 * C)                            # free view
    M2 = N * H2

    # --- single-pass training-mode BN statistics, fused with the transpose read ---
    x32 = x_nhwc.astype(jnp.float32)
    mean = jnp.mean(x32, axis=(0, 1, 2))                                 # (C,)
    ex2 = jnp.mean(jnp.square(x32), axis=(0, 1, 2))                      # (C,)
    var = jnp.maximum(ex2 - jnp.square(mean), 0.0)                       # biased var
    scale = gamma.astype(jnp.float32) / jnp.sqrt(var + eps)              # (C,)
    bias = beta.astype(jnp.float32) - mean * scale                       # (C,)
    # duplicate for the two interleaved W-taps living on the lane axis
    scale2 = jnp.concatenate([scale, scale]).reshape(1, 2 * C)
    bias2 = jnp.concatenate([bias, bias]).reshape(1, 2 * C)

    # --- conv weight: (Cout, C, 1, 1) -> (C, Cout_p); fold 1/4 pool factor; pad lanes ---
    Cout_p = ((Cout + LANE - 1) // LANE) * LANE
    w2d = conv_w.reshape(Cout, C).T.astype(jnp.float32) * 0.25           # (C, Cout)
    if Cout_p != Cout:
        w2d = jnp.pad(w2d, ((0, 0), (0, Cout_p - Cout)))                 # (C, Cout_p)

    # --- block sizing: divisor of M2 (no input padding copy), VMEM-budgeted ---
    bm = _pick_bm(M2, W2, C, Cout_p, jnp.dtype(x_nchw.dtype).itemsize)
    grid = (M2 // bm,)

    out3 = pl.pallas_call(
        transition_kernel,
        out_shape=jax.ShapeDtypeStruct((M2, W2, Cout_p), jnp.float32),
        grid_spec=pltpu.PrefetchScalarGridSpec(
            num_scalar_prefetch=0,
            grid=grid,
            in_specs=[
                pl.BlockSpec((bm, 2, W2, 2 * C), lambda i: (i, 0, 0, 0)),  # input view
                pl.BlockSpec((1, 2 * C), lambda i: (0, 0)),                # BN scale
                pl.BlockSpec((1, 2 * C), lambda i: (0, 0)),                # BN bias
                pl.BlockSpec((C, Cout_p), lambda i: (0, 0)),               # conv weight
            ],
            out_specs=pl.BlockSpec((bm, W2, Cout_p), lambda i: (i, 0, 0)),
        ),
        compiler_params=pltpu.CompilerParams(
            dimension_semantics=("parallel",),
            vmem_limit_bytes=32 * 1024 * 1024),
    )(xv, scale2, bias2, w2d)

    # --- glue: strip Cout padding, back to NCHW ---
    out = out3[:, :, :Cout].reshape(N, H2, W2, Cout)
    return out.transpose(0, 3, 1, 2)


def transition_reference(x, gamma, beta, conv_w, eps=1e-5):
    """Pure-JAX reference matching PyTorch Transition.forward (train-mode BN)."""
    mean = jnp.mean(x, axis=(0, 2, 3), keepdims=True)
    var = jnp.mean((x - mean) ** 2, axis=(0, 2, 3), keepdims=True)
    y = (x - mean) / jnp.sqrt(var + eps)
    y = y * gamma[None, :, None, None] + beta[None, :, None, None]
    y = jnp.maximum(y, 0.0)
    z = jnp.einsum('nchw,oc->nohw', y, conv_w.reshape(conv_w.shape[0], -1))
    N, O, H, W = z.shape
    return z.reshape(N, O, H // 2, 2, W // 2, 2).mean(axis=(3, 5))


if __name__ == "__main__":
    nChannels, nOutChannels = 4, 8
    N, H, W = 2, 16, 16

    key = jax.random.PRNGKey(0)
    kx, kg, kb, kw = jax.random.split(key, 4)

    x = jax.random.normal(kx, (N, nChannels, H, W), dtype=jnp.float32)
    # Deterministic synthetic parameters (shapes from the module __init__).
    gamma = jax.random.uniform(kg, (nChannels,), jnp.float32, 0.5, 1.5)   # bn1.weight
    beta = 0.1 * jax.random.normal(kb, (nChannels,), jnp.float32)         # bn1.bias
    conv_w = jax.random.normal(kw, (nOutChannels, nChannels, 1, 1),
                               jnp.float32) / np.sqrt(nChannels)          # conv1.weight

    out = jax.block_until_ready(
        jax.jit(transition_forward)(x, gamma, beta, conv_w))
    ref = transition_reference(x, gamma, beta, conv_w)

    assert out.shape == (N, nOutChannels, H // 2, W // 2), out.shape
    np.testing.assert_allclose(np.asarray(out), np.asarray(ref),
                               rtol=1e-4, atol=1e-4)
    print("KERNEL_OK")
</pallas_src>

<mosaic_0001>
module attributes {stable_mosaic.version = 11 : i64} {
  func.func @transition_kernel(%arg0: i32, %arg1: memref<2x2x8x8xf32, #tpu.memory_space<vmem>>, %arg2: memref<1x8xf32, #tpu.memory_space<vmem>>, %arg3: memref<1x8xf32, #tpu.memory_space<vmem>>, %arg4: memref<4x128xf32, #tpu.memory_space<vmem>>, %arg5: memref<2x8x128xf32, #tpu.memory_space<vmem>>) attributes {dimension_semantics = [#tpu.dimension_semantics<parallel>], iteration_bounds = array<i64: 8>, scalar_prefetch = 0 : i64, scratch_operands = 0 : i64, tpu.core_type = #tpu.core_type<tc>, window_params = [{transform_indices = @transform_0, window_bounds = array<i64: 2, 2, 8, 8>}, {pipeline_mode = #tpu.pipeline_mode<synchronous>, transform_indices = @transform_1, window_bounds = array<i64: 1, 8>}, {pipeline_mode = #tpu.pipeline_mode<synchronous>, transform_indices = @transform_2, window_bounds = array<i64: 1, 8>}, {pipeline_mode = #tpu.pipeline_mode<synchronous>, transform_indices = @transform_3, window_bounds = array<i64: 4, 128>}, {transform_indices = @transform_4, window_bounds = array<i64: 2, 8, 128>}]} {
    %c0 = arith.constant 0 : index
    %c0_0 = arith.constant 0 : index
    %0 = vector.load %arg2[%c0, %c0_0] : memref<1x8xf32, #tpu.memory_space<vmem>>, vector<1x8xf32>
    %c0_1 = arith.constant 0 : index
    %c0_2 = arith.constant 0 : index
    %1 = vector.load %arg3[%c0_1, %c0_2] : memref<1x8xf32, #tpu.memory_space<vmem>>, vector<1x8xf32>
    %c0_3 = arith.constant 0 : index
    %c0_4 = arith.constant 0 : index
    %c0_5 = arith.constant 0 : index
    %c0_6 = arith.constant 0 : index
    %2 = vector.load %arg1[%c0_3, %c0_4, %c0_5, %c0_6] : memref<2x2x8x8xf32, #tpu.memory_space<vmem>>, vector<2x1x8x8xf32>
    %3 = vector.shape_cast %2 : vector<2x1x8x8xf32> to vector<2x8x8xf32>
    %4 = vector.shape_cast %0 : vector<1x8xf32> to vector<1x1x8xf32>
    %5 = vector.broadcast %4 : vector<1x1x8xf32> to vector<2x8x8xf32>
    %6 = arith.mulf %3, %5 : vector<2x8x8xf32>
    %7 = vector.shape_cast %1 : vector<1x8xf32> to vector<1x1x8xf32>
    %8 = vector.broadcast %7 : vector<1x1x8xf32> to vector<2x8x8xf32>
    %9 = arith.addf %6, %8 : vector<2x8x8xf32>
    %cst = arith.constant 0.000000e+00 : f32
    %10 = vector.broadcast %cst : f32 to vector<2x8x8xf32>
    %11 = arith.maximumf %9, %10 : vector<2x8x8xf32>
    %c0_7 = arith.constant 0 : index
    %c1 = arith.constant 1 : index
    %c0_8 = arith.constant 0 : index
    %c0_9 = arith.constant 0 : index
    %12 = vector.load %arg1[%c0_7, %c1, %c0_8, %c0_9] : memref<2x2x8x8xf32, #tpu.memory_space<vmem>>, vector<2x1x8x8xf32>
    %13 = vector.shape_cast %12 : vector<2x1x8x8xf32> to vector<2x8x8xf32>
    %14 = vector.shape_cast %0 : vector<1x8xf32> to vector<1x1x8xf32>
    %15 = vector.broadcast %14 : vector<1x1x8xf32> to vector<2x8x8xf32>
    %16 = arith.mulf %13, %15 : vector<2x8x8xf32>
    %17 = vector.shape_cast %1 : vector<1x8xf32> to vector<1x1x8xf32>
    %18 = vector.broadcast %17 : vector<1x1x8xf32> to vector<2x8x8xf32>
    %19 = arith.addf %16, %18 : vector<2x8x8xf32>
    %cst_10 = arith.constant 0.000000e+00 : f32
    %20 = vector.broadcast %cst_10 : f32 to vector<2x8x8xf32>
    %21 = arith.maximumf %19, %20 : vector<2x8x8xf32>
    %22 = arith.addf %11, %21 : vector<2x8x8xf32>
    %23 = vector.extract_strided_slice %22 {offsets = [0, 0, 0], sizes = [2, 8, 4], strides = [1, 1, 1]} : vector<2x8x8xf32> to vector<2x8x4xf32>
    %24 = vector.extract_strided_slice %22 {offsets = [0, 0, 4], sizes = [2, 8, 4], strides = [1, 1, 1]} : vector<2x8x8xf32> to vector<2x8x4xf32>
    %25 = arith.addf %23, %24 : vector<2x8x4xf32>
    %c0_11 = arith.constant 0 : index
    %c0_12 = arith.constant 0 : index
    %26 = vector.load %arg4[%c0_11, %c0_12] : memref<4x128xf32, #tpu.memory_space<vmem>>, vector<4x128xf32>
    %cst_13 = arith.constant dense<0.000000e+00> : vector<2x8x128xf32>
    %27 = tpu.matmul %25, %26, %cst_13 {dimension_numbers = #tpu.dot_dimension_numbers<[2], [0], [0, 1], [1], [0, 0, 0, 1, 1, 1], [], []>} : vector<2x8x4xf32>, vector<4x128xf32>, vector<2x8x128xf32> -> vector<2x8x128xf32>
    %c0_14 = arith.constant 0 : index
    %c0_15 = arith.constant 0 : index
    %c0_16 = arith.constant 0 : index
    %28 = vector.load %arg5[%c0_14, %c0_15, %c0_16] : memref<2x8x128xf32, #tpu.memory_space<vmem>>, vector<2x8x128xf32>
    tpu.vector_store %arg5[%c0_14, %c0_15, %c0_16], %27 {strides = array<i32>} : memref<2x8x128xf32, #tpu.memory_space<vmem>>, vector<2x8x128xf32>,
    return
  }
  func.func @transform_0(%arg0: i32) -> (i32, i32, i32, i32) {
    %c0_i32 = arith.constant 0 : i32
    %c0_i32_0 = arith.constant 0 : i32
    %c0_i32_1 = arith.constant 0 : i32
    %c0_i32_2 = arith.constant 0 : i32
    return %arg0, %c0_i32, %c0_i32_0, %c0_i32_1 : i32, i32, i32, i32
  }
  func.func @transform_1(%arg0: i32) -> (i32, i32) {
    %c0_i32 = arith.constant 0 : i32
    %c0_i32_0 = arith.constant 0 : i32
    %c0_i32_1 = arith.constant 0 : i32
    return %c0_i32, %c0_i32_0 : i32, i32
  }
  func.func @transform_2(%arg0: i32) -> (i32, i32) {
    %c0_i32 = arith.constant 0 : i32
    %c0_i32_0 = arith.constant 0 : i32
    %c0_i32_1 = arith.constant 0 : i32
    return %c0_i32, %c0_i32_0 : i32, i32
  }
  func.func @transform_3(%arg0: i32) -> (i32, i32) {
    %c0_i32 = arith.constant 0 : i32
    %c0_i32_0 = arith.constant 0 : i32
    %c0_i32_1 = arith.constant 0 : i32
    return %c0_i32, %c0_i32_0 : i32, i32
  }
  func.func @transform_4(%arg0: i32) -> (i32, i32, i32) {
    %c0_i32 = arith.constant 0 : i32
    %c0_i32_0 = arith.constant 0 : i32
    %c0_i32_1 = arith.constant 0 : i32
    return %arg0, %c0_i32, %c0_i32_0 : i32, i32, i32
  }
}

</mosaic_0001>

<bundles_post_ra>
// kernel: transition_forward.1
= control target key start
LH: loop header
LB: loop body
LE: loop exit
PB: predicated region body
PF: predicated region fallthrough
CT: control target
= control target key end

     0   :  { %s463_s15 = smov 0   ;;  %s493_s0 = inlined_call_operand.vmem [shape: f32[16,2,8,8], index: 0, kind: input, shape index: {}]   ;;  %s494_s1 = inlined_call_operand.vmem [shape: f32[1,8], index: 1, kind: input, shape index: {}]   ;;  %s495_s2 = inlined_call_operand.vmem [shape: f32[1,8], index: 2, kind: input, shape index: {}]   ;;  %s496_s3 = inlined_call_operand.vmem [shape: f32[4,128], index: 3, kind: input, shape index: {}]   ;;  %s497_s4 = inlined_call_operand.vmem [shape: f32[16,8,128], index: 4, kind: output, shape index: {}]  }
   0x1 LB: > { %s392_s16 = sadd.s32 4294967295, %s435_s15   ;;  %p396_p0 = scmp.ge.s32.totalorder %s435_s15, 1  ;;  %s435_s15 = sphi %s463_s15, %s14_s15  }
   0x2   : > { %p164_p1 = scmp.lt.s32.totalorder %s435_s15, 9 }
   0x4   : > { %p165_p2 = pnand %p396_p0, %p164_p1 }
   0x5   : > { %s397_s17 = sshll.u32 (!%p165_p2), %s392_s16, 1  ;;  %v402_v0 = vld [vmem:[%s494_s1] ss:$0 sm:$0xff] (!%p165_p2)  ;;  %vm255_vm0 = vcmask (!%p165_p2), 1043456   ;;  %s437_s28 = smov (!%p165_p2), 124   ;;  %vm248_vm1 = vcmask (!%p165_p2), 31744  }
   0x6   : > { %168 = sbr.rel (%p165_p2) target bundleno = 360 (0x168), region = 36  ;;  %p192_p3 = scmp.lt.s32.totalorder (!%p165_p2), %s397_s17, 15  ;;  %v403_v1 = vld [vmem:[%s495_s2] ss:$0 sm:$0xff] (!%p165_p2) }
   0x7   : > { %v247_v2 = vld [vmem:[%s496_s3] sm:$0xf] (!%p165_p2) }
   0x8   : > { %415 = vmatprep.subr.msk.mxu0 (!%p165_p2), %vm255_vm0, %v247_v2 }
   0x9   : > { %416 = vmatpush3.msk.msra.mxu0 (!%p165_p2), %vm255_vm0, %v247_v2 }
   0xd   : > { %s499_s17 = smov (!%p192_p3, %s397_s17), 15 }
   0xe   : > { %s411_s18 = sshll.u32 %s499_s17, 4  ;;  %s401_s29 = sshll.u32 %s499_s17, 3 }
   0xf   : > { %s196_s23 = scalar_lea.vmem %s493_s0, %s411_s18  ;;  %s202_s6 = scalar_lea.vmem %s497_s4, %s401_s29 }
  0x10   : > { %v206_v3 = vld [vmem:[%s196_s23] sm:$0xff]  ;;  %v404_v4 = vld [vmem:[%s196_s23 + $0x8] sm:$0xff]  ;;  %v207_v5 = vld [vmem:[%s196_s23 + $0x10] sm:$0xff] }
  0x11   : > { %v214_v6 = vmul.f32 %v402_v0, %v206_v3  ;;  %v229_v7 = vmul.f32 %v404_v4, %v402_v0  ;;  %v215_v8 = vmul.f32 %v402_v0, %v207_v5  ;;  %v405_v9 = vld [vmem:[%s196_s23 + $0x18] sm:$0xff] }
  0x12   : > { %v230_v10 = vmul.f32 %v405_v9, %v402_v0 }
  0x13   : > { %v222_v11 = vadd.f32 %v403_v1, %v214_v6  ;;  %v231_v12 = vadd.f32 %v403_v1, %v229_v7  ;;  %v223_v13 = vadd.f32 %v403_v1, %v215_v8 }
  0x14   : > { %v232_v14 = vadd.f32 %v403_v1, %v230_v10 }
  0x15   : > { %v224_v15 = vmax.f32 %v222_v11, 0.0  ;;  %v233_v16 = vmax.f32 %v231_v12, 0.0  ;;  %v225_v17 = vmax.f32 %v223_v13, 0.0 }
  0x16   : > { %v234_v18 = vmax.f32 %v232_v14, 0.0 }
  0x17   : > { %v235_v19 = vadd.f32 %v233_v16, %v224_v15 }
  0x18   : > { %v236_v20 = vadd.f32 %v234_v18, %v225_v17 }
  0x19   : > { %239 = vrot.lane.b32.xlu0 %v235_v19, %s437_s28 }
  0x1d   : > { %241 = vrot.lane.b32.xlu0 %v236_v20, %s437_s28 }
  0x8b   : > { %v240_v21 = vpop.permute.xlu0 %239 }
  0x8c   : > { %v245_v22 = vadd.f32 %v240_v21, %v235_v19 }
  0x8e   : > { %417 = vmatprep.mubr.msk.f32.mxu0 %vm248_vm1, %v245_v22 }
  0x8f   : > { %v242_v23 = vpop.permute.xlu0 %241 }
  0x90   : > { %v246_v24 = vadd.f32 %v242_v23, %v236_v20 }
  0x92   : > { %418 = vmatmul.mubr.msk.f32.vlgmr.msra.gmra.mrb[0].mxu0 %vm248_vm1, %v246_v24 }
 0x165   : > { %v419_v25 = vpop.f32.mrb[0].mxu0 }
 0x166   : > { %335 = vst [vmem:[%s202_s6 + $0x8] sm:$0xff] %v419_v25  ;;  %v325_v26 = vpop.f32.mrb[1].mxu0 }
 0x167   : > { %334 = vst [vmem:[%s202_s6] sm:$0xff] %v325_v26 }
 0x168 PF: > { %s14_s15 = sadd.s32 1, %s435_s15  }
 0x169   : > { %p11_p4 = scmp.ge.s32.totalorder %s14_s15, 10  }
 0x16b   :  { %13 = sbr.rel (!%p11_p4) target bundleno = 1 (0x1), region = 67 }

</bundles_post_ra>
